<compile_context>
chip_gen: v6e
topology: v6e:2x2x1
jax: 0.10.0
libtpu: 0.0.40
codegen_flags: <defaults>
</compile_context>

<pallas_src>
import functools

import jax
import jax.numpy as jnp
from jax.experimental import pallas as pl
from jax.experimental.pallas import tpu as pltpu

LANE = 128
MAX_TILE_ROWS = 1024   # sweepable (512-2048); 1024 rows -> 512 KiB per input block


def _pow(x, p):
    """Power with semantics matching torch.pow for integer-valued float exponents."""
    p = float(p)
    if p.is_integer() and 1.0 <= p <= 4.0:
        r = x
        for _ in range(int(p) - 1):
            r = r * x
        return r
    # general (positive-base) path
    return jnp.exp(p * jnp.log(x))


def _colsum(x):
    """(R, LANE) -> (1, 1) using sublane-reduce then lane-reduce."""
    return jnp.sum(jnp.sum(x, axis=0, keepdims=True), axis=1, keepdims=True)


def _weibull_loss_kernel(yhat_ref, y_ref, ydays_ref, out_ref,
                         acc_hat, acc_cnt, acc_cdf, *,
                         lambda_mod, inv_eta, beta, eps, n_total, tile_rows):
    i = pl.program_id(0)

    @pl.when(i == 0)
    def _init():
        acc_hat[...] = jnp.zeros_like(acc_hat)
        acc_cnt[...] = jnp.zeros_like(acc_cnt)
        acc_cdf[...] = jnp.zeros_like(acc_cdf)

    y_hat = yhat_ref[...]
    y = y_ref[...]
    y_days = ydays_ref[...]

    # Flat element index of every slot in this (tile_rows, LANE) block; masks the
    # ragged tail (and any out-of-bounds boundary-block garbage) against N.
    row = jax.lax.broadcasted_iota(jnp.int32, (tile_rows, LANE), 0)
    lane = jax.lax.broadcasted_iota(jnp.int32, (tile_rows, LANE), 1)
    flat = (i * tile_rows + row) * LANE + lane
    in_bounds = flat < n_total

    # y_hat_days = y_days + y - y_hat  (then filtered to finite entries)
    y_hat_days = y_days + y - y_hat
    finite = jnp.isfinite(y_hat_days) & in_bounds

    def weibull_cdf(t):
        return 1.0 - jnp.exp(-_pow(t * inv_eta, beta))

    # TODO(synk): torch boolean-mask indexing produces a dynamically-sized tensor;
    # here we emulate it by masking non-finite entries out of the cdf_hat mean
    # (exactly equivalent whenever the torch code would not raise a shape error).
    cdf = jnp.where(in_bounds, weibull_cdf(y_days), 0.0)
    cdf_hat = jnp.where(finite, weibull_cdf(y_hat_days), 0.0)
    cnt = jnp.where(finite, 1.0, 0.0)

    # Full-vreg, unmasked accumulator updates; reduction deferred to the last step.
    acc_hat[...] += cdf_hat
    acc_cnt[...] += cnt
    acc_cdf[...] += cdf

    @pl.when(i == pl.num_programs(0) - 1)
    def _finalize():
        sum_hat = _colsum(acc_hat[...])   # (1, 1)
        n_fin = _colsum(acc_cnt[...])     # (1, 1)  (NaN loss if 0, same as torch)
        sum_cdf = _colsum(acc_cdf[...])   # (1, 1)
        mean_diff = sum_hat / n_fin - sum_cdf / float(n_total)
        out_ref[...] = lambda_mod * jnp.sqrt(mean_diff * mean_diff + eps)


def weibull_loss_rmse(y_hat, y, y_days, lambda_mod=2.0, eta=90.0, beta=2.0,
                      eps=1e-8):
    n = int(y_hat.shape[0])
    f32 = jnp.float32
    y_hat = y_hat.astype(f32)
    y = y.astype(f32)
    y_days = y_days.astype(f32)

    rows = pl.cdiv(n, LANE)
    n_lane_pad = rows * LANE
    if n_lane_pad != n:
        # TODO(synk): only hit when N % 128 != 0 — pads < 128 elements so the 2-D
        # (rows, 128) reshape is legal; padded slots are masked out in-kernel.
        pad = n_lane_pad - n
        zpad = jnp.zeros((pad,), f32)
        y_hat = jnp.concatenate([y_hat, zpad])
        y = jnp.concatenate([y, zpad])
        y_days = jnp.concatenate([y_days, zpad])

    y_hat_2d = y_hat.reshape(rows, LANE)
    y_2d = y.reshape(rows, LANE)
    y_days_2d = y_days.reshape(rows, LANE)

    # Biggest tile up to MAX_TILE_ROWS; single tile for small inputs.
    tile_rows = min(MAX_TILE_ROWS, ((rows + 7) // 8) * 8)
    grid = (pl.cdiv(rows, tile_rows),)

    kernel = functools.partial(
        _weibull_loss_kernel,
        lambda_mod=float(lambda_mod), inv_eta=1.0 / float(eta), beta=float(beta),
        eps=float(eps), n_total=n, tile_rows=tile_rows,
    )

    tile_spec = pl.BlockSpec((tile_rows, LANE), lambda i: (i, 0))

    out = pl.pallas_call(
        kernel,
        out_shape=jax.ShapeDtypeStruct((1, 1), jnp.float32),
        grid_spec=pltpu.PrefetchScalarGridSpec(
            num_scalar_prefetch=0,
            grid=grid,
            in_specs=[tile_spec, tile_spec, tile_spec],
            out_specs=pl.BlockSpec((1, 1), lambda i: (0, 0)),
            scratch_shapes=[pltpu.VMEM((tile_rows, LANE), jnp.float32)] * 3,
        ),
        compiler_params=pltpu.CompilerParams(
            dimension_semantics=("arbitrary",)),
    )(y_hat_2d, y_2d, y_days_2d)

    return out[0, 0]


def _reference(y_hat, y, y_days, lambda_mod=2.0, eta=90.0, beta=2.0, eps=1e-8):
    y_hat_days = y_days + y - y_hat
    y_hat_days = y_hat_days[jnp.isfinite(y_hat_days)]

    def weibull_cdf(t):
        return 1.0 - jnp.exp(-((t / eta) ** beta))

    cdf = weibull_cdf(y_days)
    cdf_hat = weibull_cdf(y_hat_days)
    return lambda_mod * jnp.sqrt(jnp.mean(cdf_hat - cdf) ** 2 + eps)


if __name__ == "__main__":
    key = jax.random.PRNGKey(0)

    def make_inputs(n, k):
        k1, k2, k3 = jax.random.split(k, 3)
        y = jax.random.uniform(k1, (n,), jnp.float32, 0.0, 120.0)        # true RUL
        y_hat = y + jax.random.normal(k2, (n,), jnp.float32) * 5.0       # predicted RUL
        y_days = jax.random.uniform(k3, (n,), jnp.float32, 0.0, 400.0)   # true age (days)
        return y_hat, y, y_days

    k_small, k_big = jax.random.split(key)

    # Small case: single grid step + ragged sub-128 tail.
    y_hat, y, y_days = make_inputs(3000, k_small)
    loss = jax.block_until_ready(weibull_loss_rmse(y_hat, y, y_days))
    ref = _reference(y_hat, y, y_days)
    assert jnp.allclose(loss, ref, rtol=1e-3, atol=1e-5), (loss, ref)

    # Larger case: multiple grid steps (accumulator path) + ragged last row-tile.
    y_hat, y, y_days = make_inputs(200_000, k_big)
    loss = jax.block_until_ready(weibull_loss_rmse(y_hat, y, y_days))
    ref = _reference(y_hat, y, y_days)
    assert jnp.allclose(loss, ref, rtol=1e-3, atol=1e-5), (loss, ref)

    print("KERNEL_OK")
</pallas_src>

<mosaic_0001>
module attributes {stable_mosaic.version = 11 : i64} {
  func.func @_weibull_loss_kernel(%arg0: i32, %arg1: memref<24x128xf32, #tpu.memory_space<vmem>>, %arg2: memref<24x128xf32, #tpu.memory_space<vmem>>, %arg3: memref<24x128xf32, #tpu.memory_space<vmem>>, %arg4: memref<1x1xf32, #tpu.memory_space<vmem>>, %arg5: memref<24x128xf32, #tpu.memory_space<vmem>>, %arg6: memref<24x128xf32, #tpu.memory_space<vmem>>, %arg7: memref<24x128xf32, #tpu.memory_space<vmem>>) attributes {dimension_semantics = [#tpu.dimension_semantics<arbitrary>], iteration_bounds = array<i64: 1>, scalar_prefetch = 0 : i64, scratch_operands = 3 : i64, tpu.core_type = #tpu.core_type<tc>, window_params = [{transform_indices = @transform_0, window_bounds = array<i64: 24, 128>}, {transform_indices = @transform_1, window_bounds = array<i64: 24, 128>}, {transform_indices = @transform_2, window_bounds = array<i64: 24, 128>}, {pipeline_mode = #tpu.pipeline_mode<synchronous>, transform_indices = @transform_3, window_bounds = array<i64: 1, 1>}]} {
    %c0_i32 = arith.constant 0 : i32
    %0 = arith.cmpi eq, %arg0, %c0_i32 : i32
    %1 = arith.extui %0 : i1 to i32
    %c0_i32_0 = arith.constant 0 : i32
    %2 = arith.cmpi ne, %1, %c0_i32_0 : i32
    scf.if %2 {
      %cst_30 = arith.constant 0.000000e+00 : f32
      %56 = vector.broadcast %cst_30 : f32 to vector<24x128xf32>
      %c0_31 = arith.constant 0 : index
      %c0_32 = arith.constant 0 : index
      %57 = vector.load %arg5[%c0_31, %c0_32] : memref<24x128xf32, #tpu.memory_space<vmem>>, vector<24x128xf32>
      tpu.vector_store %arg5[%c0_31, %c0_32], %56 {strides = array<i32>} : memref<24x128xf32, #tpu.memory_space<vmem>>, vector<24x128xf32>,
      %cst_33 = arith.constant 0.000000e+00 : f32
      %58 = vector.broadcast %cst_33 : f32 to vector<24x128xf32>
      %c0_34 = arith.constant 0 : index
      %c0_35 = arith.constant 0 : index
      %59 = vector.load %arg6[%c0_34, %c0_35] : memref<24x128xf32, #tpu.memory_space<vmem>>, vector<24x128xf32>
      tpu.vector_store %arg6[%c0_34, %c0_35], %58 {strides = array<i32>} : memref<24x128xf32, #tpu.memory_space<vmem>>, vector<24x128xf32>,
      %cst_36 = arith.constant 0.000000e+00 : f32
      %60 = vector.broadcast %cst_36 : f32 to vector<24x128xf32>
      %c0_37 = arith.constant 0 : index
      %c0_38 = arith.constant 0 : index
      %61 = vector.load %arg7[%c0_37, %c0_38] : memref<24x128xf32, #tpu.memory_space<vmem>>, vector<24x128xf32>
      tpu.vector_store %arg7[%c0_37, %c0_38], %60 {strides = array<i32>} : memref<24x128xf32, #tpu.memory_space<vmem>>, vector<24x128xf32>,
    } else {
    }
    %c0 = arith.constant 0 : index
    %c0_1 = arith.constant 0 : index
    %3 = vector.load %arg1[%c0, %c0_1] : memref<24x128xf32, #tpu.memory_space<vmem>>, vector<24x128xf32>
    %c0_2 = arith.constant 0 : index
    %c0_3 = arith.constant 0 : index
    %4 = vector.load %arg2[%c0_2, %c0_3] : memref<24x128xf32, #tpu.memory_space<vmem>>, vector<24x128xf32>
    %c0_4 = arith.constant 0 : index
    %c0_5 = arith.constant 0 : index
    %5 = vector.load %arg3[%c0_4, %c0_5] : memref<24x128xf32, #tpu.memory_space<vmem>>, vector<24x128xf32>
    %6 = tpu.iota {dimensions = array<i32: 0>} : vector<24x128xi32>
    %7 = tpu.iota {dimensions = array<i32: 1>} : vector<24x128xi32>
    %c24_i32 = arith.constant 24 : i32
    %8 = arith.muli %arg0, %c24_i32 : i32
    %9 = vector.broadcast %8 : i32 to vector<24x128xi32>
    %10 = arith.addi %9, %6 : vector<24x128xi32>
    %c128_i32 = arith.constant 128 : i32
    %11 = vector.broadcast %c128_i32 : i32 to vector<24x128xi32>
    %12 = arith.muli %10, %11 : vector<24x128xi32>
    %13 = arith.addi %12, %7 : vector<24x128xi32>
    %c3000_i32 = arith.constant 3000 : i32
    %14 = vector.broadcast %c3000_i32 : i32 to vector<24x128xi32>
    %15 = arith.cmpi slt, %13, %14 : vector<24x128xi32>
    %16 = arith.addf %5, %4 : vector<24x128xf32>
    %17 = arith.subf %16, %3 : vector<24x128xf32>
    %18 = tpu.weird %17 : vector<24x128xf32> -> vector<24x128xi1>
    %cst = arith.constant dense<true> : vector<24x128xi1>
    %19 = arith.xori %18, %cst : vector<24x128xi1>
    %20 = arith.andi %19, %15 : vector<24x128xi1>
    %cst_6 = arith.constant 0.0111111114 : f32
    %21 = vector.broadcast %cst_6 : f32 to vector<24x128xf32>
    %22 = arith.mulf %5, %21 : vector<24x128xf32>
    %23 = arith.mulf %22, %22 : vector<24x128xf32>
    %cst_7 = arith.constant 0.000000e+00 : f32
    %24 = vector.broadcast %cst_7 : f32 to vector<24x128xf32>
    %25 = arith.subf %24, %23 : vector<24x128xf32>
    %26 = math.exp %25 : vector<24x128xf32>
    %cst_8 = arith.constant 1.000000e+00 : f32
    %27 = vector.broadcast %cst_8 : f32 to vector<24x128xf32>
    %28 = arith.subf %27, %26 : vector<24x128xf32>
    %cst_9 = arith.constant 0.000000e+00 : f32
    %29 = vector.broadcast %cst_9 : f32 to vector<24x128xf32>
    %30 = arith.select %15, %28, %29 : vector<24x128xi1>, vector<24x128xf32>
    %cst_10 = arith.constant 0.0111111114 : f32
    %31 = vector.broadcast %cst_10 : f32 to vector<24x128xf32>
    %32 = arith.mulf %17, %31 : vector<24x128xf32>
    %33 = arith.mulf %32, %32 : vector<24x128xf32>
    %cst_11 = arith.constant 0.000000e+00 : f32
    %34 = vector.broadcast %cst_11 : f32 to vector<24x128xf32>
    %35 = arith.subf %34, %33 : vector<24x128xf32>
    %36 = math.exp %35 : vector<24x128xf32>
    %cst_12 = arith.constant 1.000000e+00 : f32
    %37 = vector.broadcast %cst_12 : f32 to vector<24x128xf32>
    %38 = arith.subf %37, %36 : vector<24x128xf32>
    %cst_13 = arith.constant 0.000000e+00 : f32
    %39 = vector.broadcast %cst_13 : f32 to vector<24x128xf32>
    %40 = arith.select %20, %38, %39 : vector<24x128xi1>, vector<24x128xf32>
    %cst_14 = arith.constant 1.000000e+00 : f32
    %cst_15 = arith.constant 0.000000e+00 : f32
    %41 = vector.broadcast %cst_14 : f32 to vector<24x128xf32>
    %42 = vector.broadcast %cst_15 : f32 to vector<24x128xf32>
    %43 = arith.select %20, %41, %42 : vector<24x128xi1>, vector<24x128xf32>
    %c0_16 = arith.constant 0 : index
    %c0_17 = arith.constant 0 : index
    %44 = vector.load %arg5[%c0_16, %c0_17] : memref<24x128xf32, #tpu.memory_space<vmem>>, vector<24x128xf32>
    %45 = arith.addf %44, %40 : vector<24x128xf32>
    %c0_18 = arith.constant 0 : index
    %c0_19 = arith.constant 0 : index
    %46 = vector.load %arg5[%c0_18, %c0_19] : memref<24x128xf32, #tpu.memory_space<vmem>>, vector<24x128xf32>
    tpu.vector_store %arg5[%c0_18, %c0_19], %45 {strides = array<i32>} : memref<24x128xf32, #tpu.memory_space<vmem>>, vector<24x128xf32>,
    %c0_20 = arith.constant 0 : index
    %c0_21 = arith.constant 0 : index
    %47 = vector.load %arg6[%c0_20, %c0_21] : memref<24x128xf32, #tpu.memory_space<vmem>>, vector<24x128xf32>
    %48 = arith.addf %47, %43 : vector<24x128xf32>
    %c0_22 = arith.constant 0 : index
    %c0_23 = arith.constant 0 : index
    %49 = vector.load %arg6[%c0_22, %c0_23] : memref<24x128xf32, #tpu.memory_space<vmem>>, vector<24x128xf32>
    tpu.vector_store %arg6[%c0_22, %c0_23], %48 {strides = array<i32>} : memref<24x128xf32, #tpu.memory_space<vmem>>, vector<24x128xf32>,
    %c0_24 = arith.constant 0 : index
    %c0_25 = arith.constant 0 : index
    %50 = vector.load %arg7[%c0_24, %c0_25] : memref<24x128xf32, #tpu.memory_space<vmem>>, vector<24x128xf32>
    %51 = arith.addf %50, %30 : vector<24x128xf32>
    %c0_26 = arith.constant 0 : index
    %c0_27 = arith.constant 0 : index
    %52 = vector.load %arg7[%c0_26, %c0_27] : memref<24x128xf32, #tpu.memory_space<vmem>>, vector<24x128xf32>
    tpu.vector_store %arg7[%c0_26, %c0_27], %51 {strides = array<i32>} : memref<24x128xf32, #tpu.memory_space<vmem>>, vector<24x128xf32>,
    %c0_i32_28 = arith.constant 0 : i32
    %53 = arith.cmpi eq, %arg0, %c0_i32_28 : i32
    %54 = arith.extui %53 : i1 to i32
    %c0_i32_29 = arith.constant 0 : i32
    %55 = arith.cmpi ne, %54, %c0_i32_29 : i32
    scf.if %55 {
      %c0_30 = arith.constant 0 : index
      %c0_31 = arith.constant 0 : index
      %56 = vector.load %arg5[%c0_30, %c0_31] : memref<24x128xf32, #tpu.memory_space<vmem>>, vector<24x128xf32>
      %cst_32 = arith.constant dense<0.000000e+00> : vector<128xf32>
      %57 = vector.multi_reduction <add>, %56, %cst_32 [0] : vector<24x128xf32> to vector<128xf32>
      %58 = vector.shape_cast %57 : vector<128xf32> to vector<1x128xf32>
      %cst_33 = arith.constant dense<0.000000e+00> : vector<1xf32>
      %59 = vector.multi_reduction <add>, %58, %cst_33 [1] : vector<1x128xf32> to vector<1xf32>
      %60 = vector.shape_cast %59 : vector<1xf32> to vector<1x1xf32>
      %c0_34 = arith.constant 0 : index
      %c0_35 = arith.constant 0 : index
      %61 = vector.load %arg6[%c0_34, %c0_35] : memref<24x128xf32, #tpu.memory_space<vmem>>, vector<24x128xf32>
      %cst_36 = arith.constant dense<0.000000e+00> : vector<128xf32>
      %62 = vector.multi_reduction <add>, %61, %cst_36 [0] : vector<24x128xf32> to vector<128xf32>
      %63 = vector.shape_cast %62 : vector<128xf32> to vector<1x128xf32>
      %cst_37 = arith.constant dense<0.000000e+00> : vector<1xf32>
      %64 = vector.multi_reduction <add>, %63, %cst_37 [1] : vector<1x128xf32> to vector<1xf32>
      %65 = vector.shape_cast %64 : vector<1xf32> to vector<1x1xf32>
      %c0_38 = arith.constant 0 : index
      %c0_39 = arith.constant 0 : index
      %66 = vector.load %arg7[%c0_38, %c0_39] : memref<24x128xf32, #tpu.memory_space<vmem>>, vector<24x128xf32>
      %cst_40 = arith.constant dense<0.000000e+00> : vector<128xf32>
      %67 = vector.multi_reduction <add>, %66, %cst_40 [0] : vector<24x128xf32> to vector<128xf32>
      %68 = vector.shape_cast %67 : vector<128xf32> to vector<1x128xf32>
      %cst_41 = arith.constant dense<0.000000e+00> : vector<1xf32>
      %69 = vector.multi_reduction <add>, %68, %cst_41 [1] : vector<1x128xf32> to vector<1xf32>
      %70 = vector.shape_cast %69 : vector<1xf32> to vector<1x1xf32>
      %71 = arith.divf %60, %65 : vector<1x1xf32>
      %cst_42 = arith.constant 3.000000e+03 : f32
      %72 = vector.broadcast %cst_42 : f32 to vector<1x1xf32>
      %73 = arith.divf %70, %72 : vector<1x1xf32>
      %74 = arith.subf %71, %73 : vector<1x1xf32>
      %75 = arith.mulf %74, %74 : vector<1x1xf32>
      %cst_43 = arith.constant 9.99999993E-9 : f32
      %76 = vector.broadcast %cst_43 : f32 to vector<1x1xf32>
      %77 = arith.addf %75, %76 : vector<1x1xf32>
      %78 = math.sqrt %77 : vector<1x1xf32>
      %cst_44 = arith.constant 2.000000e+00 : f32
      %79 = vector.broadcast %cst_44 : f32 to vector<1x1xf32>
      %80 = arith.mulf %79, %78 : vector<1x1xf32>
      %c0_45 = arith.constant 0 : index
      %c0_46 = arith.constant 0 : index
      %81 = vector.load %arg4[%c0_45, %c0_46] : memref<1x1xf32, #tpu.memory_space<vmem>>, vector<1x1xf32>
      tpu.vector_store %arg4[%c0_45, %c0_46], %80 {strides = array<i32>} : memref<1x1xf32, #tpu.memory_space<vmem>>, vector<1x1xf32>,
    } else {
    }
    return
  }
  func.func @transform_0(%arg0: i32) -> (i32, i32) {
    %c0_i32 = arith.constant 0 : i32
    %c0_i32_0 = arith.constant 0 : i32
    return %arg0, %c0_i32 : i32, i32
  }
  func.func @transform_1(%arg0: i32) -> (i32, i32) {
    %c0_i32 = arith.constant 0 : i32
    %c0_i32_0 = arith.constant 0 : i32
    return %arg0, %c0_i32 : i32, i32
  }
  func.func @transform_2(%arg0: i32) -> (i32, i32) {
    %c0_i32 = arith.constant 0 : i32
    %c0_i32_0 = arith.constant 0 : i32
    return %arg0, %c0_i32 : i32, i32
  }
  func.func @transform_3(%arg0: i32) -> (i32, i32) {
    %c0_i32 = arith.constant 0 : i32
    %c0_i32_0 = arith.constant 0 : i32
    %c0_i32_1 = arith.constant 0 : i32
    return %c0_i32, %c0_i32_0 : i32, i32
  }
}

</mosaic_0001>

<bundles_post_ra>
// kernel: tpu_custom_call.1
= control target key start
LH: loop header
LB: loop body
LE: loop exit
PB: predicated region body
PF: predicated region fallthrough
CT: control target
= control target key end

     0   :  { %8 = vsyncpa [#allocation6], 0  ;;  %s455_s0 = inlined_call_operand.hbm [shape: f32[24,128], index: 0, kind: input, shape index: {}]   ;;  %s456_s1 = inlined_call_operand.hbm [shape: f32[24,128], index: 1, kind: input, shape index: {}]   ;;  %s457_s2 = inlined_call_operand.hbm [shape: f32[24,128], index: 2, kind: input, shape index: {}]   ;;  %s458_s3 = inlined_call_operand.hbm [shape: f32[1,1], index: 3, kind: output, shape index: {}]  }
   0x1   :  { %9 = vsyncpa [#allocation9], 0 }
   0x2   :  { %10 = vsyncpa [#allocation7], 0  ;;  %s370_s12 = smov [#allocation8]   ;;  %s371_s14 = smov [#allocation5]  }
   0x3   :  { %s28_s13 = sshll.u32 %s370_s12, 4  ;;  %s16_s15 = sshll.u32 %s371_s14, 4  ;;  %s29_s13 = int_to_ptr.vmem [resolvable:$true] %s28_s13  ;;  %s17_s15 = int_to_ptr.vmem [resolvable:$true] %s16_s15 }
   0x4   :  { %s292_s16 = scalar_lea.vmem %s29_s13, 384  ;;  %p297_p1 = scmp.lt.s32.totalorder %s29_s13, %s29_s13 }
   0x5   :  { %p293_p0 = scmp.ne.s32.totalorder %s29_s13, %s292_s16  ;;  %p298_p2 = scmp.lt.s32.totalorder %s292_s16, %s292_s16 }
   0x7   :  { %p299_p3 = por %p298_p2, %p297_p1 }
   0x9   :  { %p300_p4 = pnand %p299_p3, %p293_p0 }
   0xb   :  { %303 = shalt.err (!%p300_p4)
}
   0xc   :  { %s372_s17 = smov 128   ;;  %s373_s18 = smov 8  }
   0xd   :  { %34 = dma.hbm_to_vmem [thread:$0]  %s456_s1, 384, %s29_s13, [#allocation9], %s372_s17, %s372_s17, %s373_s18  }
   0xe   :  { %s312_s21 = scalar_lea.vmem %s17_s15, 384  ;;  %p317_p6 = scmp.lt.s32.totalorder %s17_s15, %s17_s15 }
   0xf   :  { %p313_p5 = scmp.ne.s32.totalorder %s17_s15, %s312_s21  ;;  %p318_p7 = scmp.lt.s32.totalorder %s312_s21, %s312_s21 }
  0x11   :  { %p319_p8 = por %p318_p7, %p317_p6 }
  0x13   :  { %p320_p9 = pnand %p319_p8, %p313_p5 }
  0x15   :  { %323 = shalt.err (!%p320_p9)
}
  0x16   :  { %22 = dma.hbm_to_vmem [thread:$0]  %s455_s0, 384, %s17_s15, [#allocation6], %s372_s17, %s372_s17, %s373_s18  }
  0x17   :  { %s374_s24 = smov [#allocation10]  }
  0x18   :  { %s40_s25 = sshll.u32 %s374_s24, 4  ;;  %s41_s25 = int_to_ptr.vmem [resolvable:$true] %s40_s25 }
  0x19   :  { %s332_s26 = scalar_lea.vmem %s41_s25, 384  ;;  %p337_p11 = scmp.lt.s32.totalorder %s41_s25, %s41_s25 }
  0x1a   :  { %p333_p10 = scmp.ne.s32.totalorder %s41_s25, %s332_s26  ;;  %p338_p12 = scmp.lt.s32.totalorder %s332_s26, %s332_s26 }
  0x1c   :  { %p339_p13 = por %p338_p12, %p337_p11 }
  0x1e   :  { %p340_p0 = pnand %p339_p13, %p333_p10 }
  0x20   :  { %343 = shalt.err (!%p340_p0)
}
  0x21   :  { %46 = dma.hbm_to_vmem [thread:$0]  %s457_s2, 384, %s41_s25, [#allocation9], %s372_s17, %s372_s17, %s373_s18  }
  0x22   :  { %364 = dma.done.wait [#allocation6], 384  }
  0x23   :  { %365 = vsyncadd [#allocation6], 4294966912 }
  0x24   :  { %366 = dma.done.wait [#allocation9], 768  }
  0x25   :  { %367 = vsyncadd [#allocation9], 4294966528  ;;  %v78_v0 = vlaneseq  ;;  %v69_v7 = vld [vmem:[#allocation5] sm:$0xff]  ;;  %v70_v8 = vld [vmem:[#allocation5 + $0x8] sm:$0xff]  ;;  %vm375_vm4 = vmmov 1   ;;  %v376_v48 = vmov 0.0  }
  0x26   :  { %v72_v9 = vld [vmem:[#allocation8] sm:$0xff]  ;;  %v73_v10 = vld [vmem:[#allocation8 + $0x8] sm:$0xff]  ;;  %v74_v11 = vld [vmem:[#allocation8 + $0x10] sm:$0xff]  ;;  %s377_s0 = smov [#allocation11]   ;;  %vm242_vm15 = vcmask 0  }
  0x27   :  { %v79_v1 = vshrl.u32 %v78_v0, 7  ;;  %v83_v4 = vand.u32 127, %v78_v0  ;;  %v75_v14 = vld [vmem:[#allocation10] sm:$0xff]  ;;  %v76_v15 = vld [vmem:[#allocation10 + $0x8] sm:$0xff]  ;;  %v77_v16 = vld [vmem:[#allocation10 + $0x10] sm:$0xff]  ;;  %s250_s2 = sshll.u32 %s377_s0, 4  ;;  %s251_s2 = int_to_ptr.vmem [resolvable:$true] %s250_s2 }
  0x28   :  { %v71_v17 = vld [vmem:[#allocation5 + $0x10] sm:$0xff]  ;;  %v98_v19 = vadd.f32 %v75_v14, %v72_v9  ;;  %v99_v20 = vadd.f32 %v76_v15, %v73_v10  ;;  %v100_v21 = vadd.f32 %v77_v16, %v74_v11  ;;  %v113_v22 = vmul.f32 0.011111111, %v75_v14  ;;  %s344_s28 = scalar_lea.vmem %s251_s2, 16  ;;  %s348_s29 = scalar_lea.vmem %s251_s2, 32 }
  0x29   :  { %v80_v2 = vadd.s32 8, %v79_v1  ;;  %v81_v3 = vadd.s32 16, %v79_v1  ;;  %v89_v5 = vmul.u32 128, %v79_v1  ;;  %v114_v23 = vmul.f32 0.011111111, %v76_v15  ;;  %p345_p1 = scmp.ne.s32.totalorder %s251_s2, %s344_s28  ;;  %p349_p2 = scmp.lt.s32.totalorder %s251_s2, %s251_s2 }
  0x2a   :  { %v115_v24 = vmul.f32 0.011111111, %v77_v16  ;;  %v101_v26 = vsub.f32 %v98_v19, %v69_v7  ;;  %v102_v27 = vsub.f32 %v99_v20, %v70_v8  ;;  %v103_v28 = vsub.f32 %v100_v21, %v71_v17  ;;  %p350_p3 = scmp.lt.s32.totalorder %s348_s29, %s344_s28 }
  0x2b   :  { %v90_v6 = vmul.u32 128, %v80_v2  ;;  %v91_v12 = vmul.u32 128, %v81_v3  ;;  %v407_v13 = vadd.s32 %v89_v5, %v83_v4  ;;  %v116_v29 = vmul.f32 %v113_v22, %v113_v22 }
  0x2c   :  { %v117_v30 = vmul.f32 %v114_v23, %v114_v23  ;;  %v118_v31 = vmul.f32 %v115_v24, %v115_v24  ;;  %vm104_vm1 = vweird.f32 %v101_v26  ;;  %vm105_vm2 = vweird.f32 %v102_v27  ;;  %p351_p4 = por %p350_p3, %p349_p2 }
  0x2d   :  { %v409_v18 = vadd.s32 %v90_v6, %v83_v4  ;;  %v411_v25 = vadd.s32 %v91_v12, %v83_v4  ;;  %vm95_vm0 = vcmp.lt.s32.totalorder %v407_v13, 3000  ;;  %v134_v32 = vmul.f32 0.011111111, %v101_v26  ;;  %vm107_vm5 = vmxor %vm104_vm1, %vm375_vm4 }
  0x2e   :  { %v135_v33 = vmul.f32 0.011111111, %v102_v27  ;;  %vm106_vm3 = vweird.f32 %v103_v28  ;;  %v136_v34 = vmul.f32 0.011111111, %v103_v28  ;;  %v119_v35 = vsub.f32 0.0, %v116_v29  ;;  %vm108_vm7 = vmxor %vm105_vm2, %vm375_vm4  ;;  %p352_p5 = pnand %p351_p4, %p345_p1 }
  0x2f   :  { %v120_v36 = vsub.f32 0.0, %v117_v30  ;;  %vm96_vm6 = vcmp.lt.s32.totalorder %v409_v18, 3000  ;;  %v137_v37 = vmul.f32 %v134_v32, %v134_v32  ;;  %v121_v39 = vsub.f32 0.0, %v118_v31  ;;  %vm109_vm9 = vmxor %vm106_vm3, %vm375_vm4 }
  0x30   :  { %v138_v38 = vmul.f32 %v135_v33, %v135_v33  ;;  %vm97_vm8 = vcmp.lt.s32.totalorder %v411_v25, 3000  ;;  %v139_v40 = vmul.f32 %v136_v34, %v136_v34  ;;  %v122_v41 = vmul.f32 1.442695, %v119_v35  ;;  %vm418_vm10 = vmand %vm107_vm5, %vm95_vm0 }
  0x31   :  { %v124_v42 = vmul.f32 1.442695, %v120_v36  ;;  %v126_v44 = vmul.f32 1.442695, %v121_v39  ;;  %v140_v45 = vsub.f32 0.0, %v137_v37  ;;  %vm424_vm11 = vmand %vm108_vm7, %vm96_vm6  ;;  %v155_v49 = vsel %vm418_vm10, 1.0, %v376_v48 }
  0x32   :  { %v141_v46 = vsub.f32 0.0, %v138_v38  ;;  %268 = vpow2.f32 %v122_v41  ;;  %v142_v50 = vsub.f32 0.0, %v139_v40  ;;  %vm432_vm12 = vmand %vm109_vm9, %vm97_vm8  ;;  %v156_v52 = vsel %vm424_vm11, 1.0, %v376_v48 }
  0x33   :  { %270 = vpow2.f32 %v124_v42  ;;  %v143_v53 = vmul.f32 1.442695, %v140_v45  ;;  %v157_v55 = vsel %vm432_vm12, 1.0, %v376_v48  ;;  %v204_v56 = vadd.f32 %v156_v52, %v155_v49 }
  0x34   :  { %v145_v54 = vmul.f32 1.442695, %v141_v46  ;;  %272 = vpow2.f32 %v126_v44  ;;  %v147_v57 = vmul.f32 1.442695, %v142_v50 }
  0x35   :  { %274 = vpow2.f32 %v143_v53  ;;  %v205_v58 = vadd.f32 %v204_v56, %v157_v55 }
  0x36   :  { %276 = vpow2.f32 %v145_v54 }
  0x37   :  { %278 = vpow2.f32 %v147_v57  ;;  %v206_v59 = vrot.slane %v205_v58, 4 }
  0x39   :  { %v207_v60 = vadd.f32 %v206_v59, %v205_v58 }
  0x3b   :  { %v208_v61 = vrot.slane %v207_v60, 2 }
  0x3d   :  { %v209_v62 = vadd.f32 %v208_v61, %v207_v60 }
  0x3f   :  { %v269_v63 = vpop.eup %268  ;;  %v210_v1 = vrot.slane %v209_v62, 1 }
  0x40   :  { %v271_v0 = vpop.eup %270  ;;  %v128_v2 = vsub.f32 1.0, %v269_v63 }
  0x41   :  { %v273_v3 = vpop.eup %272  ;;  %v129_v4 = vsub.f32 1.0, %v271_v0  ;;  %v211_v6 = vadd.f32 %v210_v1, %v209_v62 }
  0x42   :  { %v275_v5 = vpop.eup %274  ;;  %v130_v7 = vsub.f32 1.0, %v273_v3  ;;  %v131_v8 = vsel %vm95_vm0, %v128_v2, 0.0 }
  0x43   :  { %v277_v9 = vpop.eup %276  ;;  %v132_v10 = vsel %vm96_vm6, %v129_v4, 0.0  ;;  %v149_v11 = vsub.f32 1.0, %v275_v5  ;;  %212 = vadd.xlane.f32.xlu0 %v211_v6 }
  0x44   :  { %v279_v12 = vpop.eup %278  ;;  %v133_v14 = vsel %vm97_vm8, %v130_v7, 0.0  ;;  %v217_v15 = vadd.f32 %v132_v10, %v131_v8  ;;  %v150_v16 = vsub.f32 1.0, %v277_v9 }
  0x45   :  { %v151_v17 = vsub.f32 1.0, %v279_v12  ;;  %v152_v19 = vsel %vm418_vm10, %v149_v11, 0.0 }
  0x46   :  { %v218_v20 = vadd.f32 %v217_v15, %v133_v14  ;;  %v153_v13 = vsel %vm424_vm11, %v150_v16, 0.0 }
  0x47   :  { %v154_v18 = vsel %vm432_vm12, %v151_v17, 0.0  ;;  %v191_v21 = vadd.f32 %v153_v13, %v152_v19 }
  0x48   :  { %v219_v22 = vrot.slane %v218_v20, 4 }
  0x49   :  { %v192_v23 = vadd.f32 %v191_v21, %v154_v18 }
  0x4a   :  { %v220_v24 = vadd.f32 %v219_v22, %v218_v20 }
  0x4b   :  { %v193_v26 = vrot.slane %v192_v23, 4 }
  0x4c   :  { %v221_v25 = vrot.slane %v220_v24, 2 }
  0x4d   :  { %v194_v27 = vadd.f32 %v193_v26, %v192_v23 }
  0x4e   :  { %v222_v28 = vadd.f32 %v221_v25, %v220_v24 }
  0x4f   :  { %v195_v29 = vrot.slane %v194_v27, 2 }
  0x50   :  { %v223_v30 = vrot.slane %v222_v28, 1 }
  0x51   :  { %v196_v31 = vadd.f32 %v195_v29, %v194_v27 }
  0x52   :  { %v224_v32 = vadd.f32 %v223_v30, %v222_v28 }
  0x53   :  { %v197_v33 = vrot.slane %v196_v31, 1 }
  0x54   :  { %225 = vadd.xlane.f32.xlu1 %v224_v32 }
  0x55   :  { %v198_v34 = vadd.f32 %v197_v33, %v196_v31 }
  0x57   :  { %199 = vadd.xlane.f32.xlu0 %v198_v34 }
  0xcc   :  { %v213_v35 = vpop.xlane.xlu0 %212 }
  0xcd   :  { %280 = vrcp.f32 %v213_v35 }
  0xda   :  { %v281_v37 = vpop.eup %280 }
  0xdd   :  { %v226_v36 = vpop.xlane.xlu1 %225 }
  0xde   :  { %v230_v38 = vmul.f32 0.00033333333, %v226_v36 }
  0xe0   :  { %v200_v39 = vpop.xlane.xlu0 %199 }
  0xe1   :  { %v228_v40 = vmul.f32 %v281_v37, %v200_v39 }
  0xe3   :  { %v231_v41 = vsub.f32 %v228_v40, %v230_v38 }
  0xe5   :  { %v232_v42 = vmul.f32 %v231_v41, %v231_v41 }
  0xe7   :  { %v233_v43 = vadd.f32 1e-08, %v232_v42 }
  0xe9   :  { %282 = vrsqrt.f32 %v233_v43  ;;  %vm236_vm13 = vcmp.eq.f32.partialorder %v233_v43, inf  ;;  %v239_v46 = vand.u32 2147483648, %v233_v43  ;;  %vm238_vm14 = vcmp.eq.f32.partialorder %v233_v43, 0.0 }
  0xf6   :  { %v283_v44 = vpop.eup %282 }
  0xf7   :  { %v235_v45 = vmul.f32 %v283_v44, %v233_v43 }
  0xf9   :  { %v237_v47 = vsel %vm236_vm13, %v233_v43, %v235_v45 }
  0xfa   :  { %v240_v48 = vsel %vm238_vm14, %v239_v46, %v237_v47 }
  0xfb   :  { %v241_v49 = vmul.f32 2.0, %v240_v48 }
  0xfd   :  { %243 = vst.msk [vmem:[#allocation11] sm:$0x1] %vm242_vm15, %v241_v49 }
  0xfe   :  { %355 = shalt.err (!%p352_p5)
}
  0xff   :  { %253 = dma.vmem_to_hbm [thread:$0]  %s251_s2, 16, %s458_s3, [#allocation7]  }
 0x100   :  { %368 = dma.done.wait [#allocation7], 16  }
 0x101   :  { %369 = vsyncadd [#allocation7], 4294967280 }
 0x102   :  { %257 = vsyncpa [#allocation6], 1 }
 0x103   :  { %258 = vsyncpa [#allocation9], 1 }
 0x104   :  { %259 = vsyncpa [#allocation7], 1 }

</bundles_post_ra>
